<compile_context>
chip_gen: v7x
topology: tpu7x:2x2x1
jax: 0.10.0
libtpu: 0.0.40
codegen_flags: <defaults>
</compile_context>

<pallas_src>
import functools

import jax
import jax.numpy as jnp
from jax.experimental import pallas as pl
from jax.experimental.pallas import tpu as pltpu

# Model dimensions implied by fc1 = Linear(4*4*8, 32):
H_IN = W_IN = 8          # input spatial (1 channel)
K1, C1_OUT = 3, 4        # conv1 kernel / out channels (pad=1 -> 8x8 out)
K2, C2_OUT = 5, 8        # conv2 kernel / out channels (valid -> 4x4 out)
H1 = W1 = 8              # conv1 output spatial
H2 = W2 = 4              # conv2 output spatial
F_IN = H_IN * W_IN       # 64   flat input features
F_H1 = C1_OUT * H1 * W1  # 256  flat conv1 features (NCHW order)
FLAT = C2_OUT * H2 * W2  # 128  flat conv2 features == torch flatten order
FC1_OUT = 32

_DN = ("NCHW", "OIHW", "NCHW")


def _round_up(x, m):
    return (x + m - 1) // m * m


# ---------------------------------------------------------------------------
# Fused kernel: one grid step == Bt images, everything stays on-chip.
#   x_ref    : (Bt, 64)   raw flattened images
#   a1_ref   : (64, 256)  conv1 as a dense matrix (NCHW-flat columns)
#   a2_ref   : (256, 128) conv2 as a dense matrix (columns == torch flatten)
#   wf1_ref  : (128, 32)  fc1 weight (transposed)
#   biasv_ref: (8, 256)   row0=b1 expanded, row1=b2 expanded, row2=fb1
#   fw2r_ref : (8, 32)    fc2 weight replicated on 8 sublanes
#   fb2_ref  : (1,) SMEM  fc2 bias scalar
#   out_ref  : (8, Bt)    batch on the lane axis (all 8 rows identical)
# ---------------------------------------------------------------------------
def _fused_cnn_kernel(x_ref, a1_ref, a2_ref, wf1_ref, biasv_ref, fw2r_ref,
                      fb2_ref, out_ref):
    x = x_ref[...]                                            # (Bt, 64)
    b1 = biasv_ref[0:1, :]                                    # (1, 256)
    b2 = biasv_ref[1:2, 0:FLAT]                               # (1, 128)
    fb1 = biasv_ref[2:3, 0:FC1_OUT]                           # (1, 32)

    # conv1 (+bias, relu): one MXU matmul, M=Bt, K=64, N=256.
    h1 = jnp.dot(x, a1_ref[...], preferred_element_type=jnp.float32)
    h1 = jnp.maximum(h1 + b1, 0.0)                            # (Bt, 256)

    # conv2 (+bias, relu): one MXU matmul, K=256, N=128.  Output columns are
    # already in torch's x.view(-1, 128) order -> flatten is free.
    h2 = jnp.dot(h1, a2_ref[...], preferred_element_type=jnp.float32)
    h2 = jnp.maximum(h2 + b2, 0.0)                            # (Bt, 128)

    # fc1 (+bias, tanh): K=128, N=32.
    h3 = jnp.dot(h2, wf1_ref[...], preferred_element_type=jnp.float32)
    h3 = jnp.tanh(h3 + fb1)                                   # (Bt, 32)

    # fc2, transposed so the batch lands on the lane axis of the output block.
    rows = jnp.dot(fw2r_ref[...], h3.T,
                   preferred_element_type=jnp.float32)        # (8, Bt)
    out_ref[...] = (rows + fb2_ref[0]).astype(out_ref.dtype)


# ---------------------------------------------------------------------------
# One-time parameter prep: fold the convolutions into dense matrices by
# probing them with identity ("delta") images, pre-transpose fc1, pack biases.
# ---------------------------------------------------------------------------
def prepare_params(params):
    w1, b1, w2, b2, fw1, fb1, fw2, fb2 = params
    f32 = jnp.float32

    # conv1 as a dense (64, 256) matrix (no bias): response to delta inputs.
    eye1 = jnp.eye(F_IN, dtype=f32).reshape(F_IN, 1, H_IN, W_IN)
    a1 = jax.lax.conv_general_dilated(
        eye1, w1.astype(f32), (1, 1), ((1, 1), (1, 1)),
        dimension_numbers=jax.lax.conv_dimension_numbers(eye1.shape, w1.shape, _DN))
    a1 = a1.reshape(F_IN, F_H1)                                # (64, 256)

    # conv2 as a dense (256, 128) matrix (no bias).
    eye2 = jnp.eye(F_H1, dtype=f32).reshape(F_H1, C1_OUT, H1, W1)
    a2 = jax.lax.conv_general_dilated(
        eye2, w2.astype(f32), (1, 1), "VALID",
        dimension_numbers=jax.lax.conv_dimension_numbers(eye2.shape, w2.shape, _DN))
    a2 = a2.reshape(F_H1, FLAT)                                # (256, 128)

    wf1t = fw1.T.astype(f32)                                   # (128, 32)

    # Packed small vector operands (one VMEM tile instead of many tiny specs).
    biasv = jnp.zeros((8, F_H1), f32)
    biasv = biasv.at[0, :].set(jnp.repeat(b1.astype(f32), H1 * W1))
    biasv = biasv.at[1, :FLAT].set(jnp.repeat(b2.astype(f32), H2 * W2))
    biasv = biasv.at[2, :FC1_OUT].set(fb1.astype(f32))

    fw2r = jnp.broadcast_to(fw2.astype(f32).reshape(1, FC1_OUT),
                            (8, FC1_OUT)) * 1.0                # (8, 32), materialized
    fb2s = fb2.astype(f32).reshape(1)                          # (1,) SMEM scalar

    return (a1, a2, wf1t, biasv, fw2r, fb2s)


# ---------------------------------------------------------------------------
# Forward pass: ONE pallas_call, Bt images per grid step, raw images in,
# lane-dense (8, B_padded) result out.
# ---------------------------------------------------------------------------
@functools.partial(jax.jit, static_argnames=("block_b",))
def cnn_forward(x, prepped, block_b=256):
    a1, a2, wf1t, biasv, fw2r, fb2s = prepped
    B = x.shape[0]
    xf = x.reshape(B, F_IN).astype(jnp.float32)                # raw 8x8, no im2col

    bt = min(block_b, _round_up(B, 8))                         # sublane multiple
    Bp = _round_up(B, bt)
    if Bp != B:
        xf = jnp.pad(xf, ((0, Bp - B), (0, 0)))
    nb = Bp // bt

    out = pl.pallas_call(
        _fused_cnn_kernel,
        out_shape=jax.ShapeDtypeStruct((8, Bp), jnp.float32),
        grid=(nb,),
        in_specs=[
            pl.BlockSpec((bt, F_IN), lambda n: (n, 0)),        # image tile
            pl.BlockSpec(a1.shape, lambda n: (0, 0)),          # conv1 dense
            pl.BlockSpec(a2.shape, lambda n: (0, 0)),          # conv2 dense
            pl.BlockSpec(wf1t.shape, lambda n: (0, 0)),        # fc1 weight^T
            pl.BlockSpec(biasv.shape, lambda n: (0, 0)),       # packed biases
            pl.BlockSpec(fw2r.shape, lambda n: (0, 0)),        # fc2 weight (x8)
            pl.BlockSpec(memory_space=pltpu.MemorySpace.SMEM), # fc2 bias scalar
        ],
        out_specs=pl.BlockSpec((8, bt), lambda n: (0, n)),     # batch on lanes
        compiler_params=pltpu.CompilerParams(
            dimension_semantics=("parallel",)),
    )(xf, a1, a2, wf1t, biasv, fw2r, fb2s)

    return out[0, :B].reshape(B, 1)


# ---------------------------------------------------------------------------
# Pure-JAX reference (correctness check)
# ---------------------------------------------------------------------------
def reference_forward(x, params):
    w1, b1, w2, b2, fw1, fb1, fw2, fb2 = params
    h1 = jax.lax.conv_general_dilated(
        x, w1, (1, 1), ((1, 1), (1, 1)),
        dimension_numbers=jax.lax.conv_dimension_numbers(x.shape, w1.shape, _DN))
    h1 = jnp.maximum(h1 + b1.reshape(1, -1, 1, 1), 0.0)
    h2 = jax.lax.conv_general_dilated(
        h1, w2, (1, 1), "VALID",
        dimension_numbers=jax.lax.conv_dimension_numbers(h1.shape, w2.shape, _DN))
    h2 = jnp.maximum(h2 + b2.reshape(1, -1, 1, 1), 0.0)
    flat = h2.reshape(x.shape[0], -1)
    h3 = jnp.tanh(flat @ fw1.T + fb1)
    return h3 @ fw2.T + fb2


def make_params(key):
    ks = jax.random.split(key, 8)
    w1 = jax.random.normal(ks[0], (C1_OUT, 1, K1, K1), jnp.float32) * 0.2
    b1 = jax.random.normal(ks[1], (C1_OUT,), jnp.float32) * 0.05
    w2 = jax.random.normal(ks[2], (C2_OUT, C1_OUT, K2, K2), jnp.float32) * 0.1
    b2 = jax.random.normal(ks[3], (C2_OUT,), jnp.float32) * 0.05
    fw1 = jax.random.normal(ks[4], (FC1_OUT, FLAT), jnp.float32) * 0.1
    fb1 = jax.random.normal(ks[5], (FC1_OUT,), jnp.float32) * 0.05
    fw2 = jax.random.normal(ks[6], (1, FC1_OUT), jnp.float32) * 0.1
    fb2 = jax.random.normal(ks[7], (1,), jnp.float32) * 0.05
    return (w1, b1, w2, b2, fw1, fb1, fw2, fb2)


if __name__ == "__main__":
    key = jax.random.PRNGKey(0)
    pkey, xkey1, xkey2 = jax.random.split(key, 3)
    params = make_params(pkey)
    prepped = prepare_params(params)

    # Small spec-sized input: (B, 1, 8, 8) NCHW (fc1 expects 4*4*8 features).
    x_small = jax.random.normal(xkey1, (2, 1, 8, 8), jnp.float32)
    out_small = jax.block_until_ready(cnn_forward(x_small, prepped))
    ref_small = jax.block_until_ready(reference_forward(x_small, params))
    assert out_small.shape == (2, 1), out_small.shape
    assert jnp.allclose(out_small, ref_small, atol=1e-3, rtol=1e-3), (out_small, ref_small)

    # Batched input exercising multiple parallel grid steps (2 tiles of 256).
    x_big = jax.random.normal(xkey2, (512, 1, 8, 8), jnp.float32)
    out_big = jax.block_until_ready(cnn_forward(x_big, prepped))
    ref_big = jax.block_until_ready(reference_forward(x_big, params))
    assert out_big.shape == (512, 1), out_big.shape
    assert jnp.allclose(out_big, ref_big, atol=1e-3, rtol=1e-3)

    print("KERNEL_OK")
</pallas_src>

<mosaic_0001>
module attributes {stable_mosaic.version = 11 : i64} {
  func.func @_fused_cnn_kernel(%arg0: i32, %arg1: memref<8x64xf32, #tpu.memory_space<vmem>>, %arg2: memref<64x256xf32, #tpu.memory_space<vmem>>, %arg3: memref<256x128xf32, #tpu.memory_space<vmem>>, %arg4: memref<128x32xf32, #tpu.memory_space<vmem>>, %arg5: memref<8x256xf32, #tpu.memory_space<vmem>>, %arg6: memref<8x32xf32, #tpu.memory_space<vmem>>, %arg7: memref<1xf32, #tpu.memory_space<smem>>, %arg8: memref<8x8xf32, #tpu.memory_space<vmem>>) attributes {dimension_semantics = [#tpu.dimension_semantics<parallel>], iteration_bounds = array<i64: 1>, scalar_prefetch = 0 : i64, scratch_operands = 0 : i64, tpu.core_type = #tpu.core_type<tc>, window_params = [{transform_indices = @transform_0, window_bounds = array<i64: 8, 64>}, {pipeline_mode = #tpu.pipeline_mode<synchronous>, transform_indices = @transform_1, window_bounds = array<i64: 64, 256>}, {pipeline_mode = #tpu.pipeline_mode<synchronous>, transform_indices = @transform_2, window_bounds = array<i64: 256, 128>}, {pipeline_mode = #tpu.pipeline_mode<synchronous>, transform_indices = @transform_3, window_bounds = array<i64: 128, 32>}, {pipeline_mode = #tpu.pipeline_mode<synchronous>, transform_indices = @transform_4, window_bounds = array<i64: 8, 256>}, {pipeline_mode = #tpu.pipeline_mode<synchronous>, transform_indices = @transform_5, window_bounds = array<i64: 8, 32>}, {transform_indices = @transform_6, window_bounds = array<i64: 1>}, {transform_indices = @transform_7, window_bounds = array<i64: 8, 8>}]} {
    %c0 = arith.constant 0 : index
    %c0_0 = arith.constant 0 : index
    %0 = vector.load %arg1[%c0, %c0_0] : memref<8x64xf32, #tpu.memory_space<vmem>>, vector<8x64xf32>
    %c0_1 = arith.constant 0 : index
    %c0_2 = arith.constant 0 : index
    %1 = vector.load %arg5[%c0_1, %c0_2] : memref<8x256xf32, #tpu.memory_space<vmem>>, vector<1x256xf32>
    %c1 = arith.constant 1 : index
    %c0_3 = arith.constant 0 : index
    %2 = vector.load %arg5[%c1, %c0_3] : memref<8x256xf32, #tpu.memory_space<vmem>>, vector<1x128xf32>
    %c2 = arith.constant 2 : index
    %c0_4 = arith.constant 0 : index
    %3 = vector.load %arg5[%c2, %c0_4] : memref<8x256xf32, #tpu.memory_space<vmem>>, vector<1x32xf32>
    %c0_5 = arith.constant 0 : index
    %c0_6 = arith.constant 0 : index
    %4 = vector.load %arg2[%c0_5, %c0_6] : memref<64x256xf32, #tpu.memory_space<vmem>>, vector<64x256xf32>
    %cst = arith.constant dense<0.000000e+00> : vector<8x256xf32>
    %5 = tpu.matmul %0, %4, %cst {dimension_numbers = #tpu.dot_dimension_numbers<[1], [0], [0], [1], [0, 0, 1, 1], [], []>} : vector<8x64xf32>, vector<64x256xf32>, vector<8x256xf32> -> vector<8x256xf32>
    %6 = vector.broadcast %1 : vector<1x256xf32> to vector<8x256xf32>
    %7 = arith.addf %5, %6 : vector<8x256xf32>
    %cst_7 = arith.constant 0.000000e+00 : f32
    %8 = vector.broadcast %cst_7 : f32 to vector<8x256xf32>
    %9 = arith.maximumf %7, %8 : vector<8x256xf32>
    %c0_8 = arith.constant 0 : index
    %c0_9 = arith.constant 0 : index
    %10 = vector.load %arg3[%c0_8, %c0_9] : memref<256x128xf32, #tpu.memory_space<vmem>>, vector<256x128xf32>
    %cst_10 = arith.constant dense<0.000000e+00> : vector<8x128xf32>
    %11 = tpu.matmul %9, %10, %cst_10 {dimension_numbers = #tpu.dot_dimension_numbers<[1], [0], [0], [1], [0, 0, 1, 1], [], []>} : vector<8x256xf32>, vector<256x128xf32>, vector<8x128xf32> -> vector<8x128xf32>
    %12 = vector.broadcast %2 : vector<1x128xf32> to vector<8x128xf32>
    %13 = arith.addf %11, %12 : vector<8x128xf32>
    %cst_11 = arith.constant 0.000000e+00 : f32
    %14 = vector.broadcast %cst_11 : f32 to vector<8x128xf32>
    %15 = arith.maximumf %13, %14 : vector<8x128xf32>
    %c0_12 = arith.constant 0 : index
    %c0_13 = arith.constant 0 : index
    %16 = vector.load %arg4[%c0_12, %c0_13] : memref<128x32xf32, #tpu.memory_space<vmem>>, vector<128x32xf32>
    %cst_14 = arith.constant dense<0.000000e+00> : vector<8x32xf32>
    %17 = tpu.matmul %15, %16, %cst_14 {dimension_numbers = #tpu.dot_dimension_numbers<[1], [0], [0], [1], [0, 0, 1, 1], [], []>} : vector<8x128xf32>, vector<128x32xf32>, vector<8x32xf32> -> vector<8x32xf32>
    %18 = vector.broadcast %3 : vector<1x32xf32> to vector<8x32xf32>
    %19 = arith.addf %17, %18 : vector<8x32xf32>
    %20 = math.tanh %19 : vector<8x32xf32>
    %c0_15 = arith.constant 0 : index
    %c0_16 = arith.constant 0 : index
    %21 = vector.load %arg6[%c0_15, %c0_16] : memref<8x32xf32, #tpu.memory_space<vmem>>, vector<8x32xf32>
    %22 = tpu.transpose %20, [1, 0] : vector<8x32xf32> -> vector<32x8xf32>
    %cst_17 = arith.constant dense<0.000000e+00> : vector<8x8xf32>
    %23 = tpu.matmul %21, %22, %cst_17 {dimension_numbers = #tpu.dot_dimension_numbers<[1], [0], [0], [1], [0, 0, 1, 1], [], []>} : vector<8x32xf32>, vector<32x8xf32>, vector<8x8xf32> -> vector<8x8xf32>
    %c0_18 = arith.constant 0 : index
    %24 = memref.load %arg7[%c0_18] : memref<1xf32, #tpu.memory_space<smem>>
    %25 = vector.broadcast %24 : f32 to vector<8x8xf32>
    %26 = arith.addf %23, %25 : vector<8x8xf32>
    %c0_19 = arith.constant 0 : index
    %c0_20 = arith.constant 0 : index
    %27 = vector.load %arg8[%c0_19, %c0_20] : memref<8x8xf32, #tpu.memory_space<vmem>>, vector<8x8xf32>
    tpu.vector_store %arg8[%c0_19, %c0_20], %26 {strides = array<i32>} : memref<8x8xf32, #tpu.memory_space<vmem>>, vector<8x8xf32>,
    return
  }
  func.func @transform_0(%arg0: i32) -> (i32, i32) {
    %c0_i32 = arith.constant 0 : i32
    %c0_i32_0 = arith.constant 0 : i32
    return %arg0, %c0_i32 : i32, i32
  }
  func.func @transform_1(%arg0: i32) -> (i32, i32) {
    %c0_i32 = arith.constant 0 : i32
    %c0_i32_0 = arith.constant 0 : i32
    %c0_i32_1 = arith.constant 0 : i32
    return %c0_i32, %c0_i32_0 : i32, i32
  }
  func.func @transform_2(%arg0: i32) -> (i32, i32) {
    %c0_i32 = arith.constant 0 : i32
    %c0_i32_0 = arith.constant 0 : i32
    %c0_i32_1 = arith.constant 0 : i32
    return %c0_i32, %c0_i32_0 : i32, i32
  }
  func.func @transform_3(%arg0: i32) -> (i32, i32) {
    %c0_i32 = arith.constant 0 : i32
    %c0_i32_0 = arith.constant 0 : i32
    %c0_i32_1 = arith.constant 0 : i32
    return %c0_i32, %c0_i32_0 : i32, i32
  }
  func.func @transform_4(%arg0: i32) -> (i32, i32) {
    %c0_i32 = arith.constant 0 : i32
    %c0_i32_0 = arith.constant 0 : i32
    %c0_i32_1 = arith.constant 0 : i32
    return %c0_i32, %c0_i32_0 : i32, i32
  }
  func.func @transform_5(%arg0: i32) -> (i32, i32) {
    %c0_i32 = arith.constant 0 : i32
    %c0_i32_0 = arith.constant 0 : i32
    %c0_i32_1 = arith.constant 0 : i32
    return %c0_i32, %c0_i32_0 : i32, i32
  }
  func.func @transform_6(%arg0: i32) -> i32 {
    %c0_i32 = arith.constant 0 : i32
    %c0_i32_0 = arith.constant 0 : i32
    return %c0_i32 : i32
  }
  func.func @transform_7(%arg0: i32) -> (i32, i32) {
    %c0_i32 = arith.constant 0 : i32
    %c0_i32_0 = arith.constant 0 : i32
    return %c0_i32, %arg0 : i32, i32
  }
}

</mosaic_0001>

<bundles_post_ra>
// kernel: cnn_forward.1
= control target key start
LH: loop header
LB: loop body
LE: loop exit
PB: predicated region body
PF: predicated region fallthrough
CT: control target
= control target key end

     0   :  { %13 = vsyncpa [#allocation4], 0  ;;  %s627_s24 = smov [#allocation3]   ;;  %s806_s0 = inlined_call_operand.vmem [shape: f32[8,64], index: 0, kind: input, shape index: {}]   ;;  %s807_s1 = inlined_call_operand.vmem [shape: f32[64,256], index: 1, kind: input, shape index: {}]   ;;  %s808_s2 = inlined_call_operand.hbm [shape: f32[256,128], index: 2, kind: input, shape index: {}]   ;;  %s809_s3 = inlined_call_operand.vmem [shape: f32[128,32], index: 3, kind: input, shape index: {}]   ;;  %s810_s4 = inlined_call_operand.vmem [shape: f32[8,256], index: 4, kind: input, shape index: {}]   ;;  %s811_s5 = inlined_call_operand.vmem [shape: f32[8,32], index: 5, kind: input, shape index: {}]   ;;  %s812_s6 = inlined_call_operand.<no memory space> [shape: f32[1], index: 6, kind: input, shape index: {}]   ;;  %s813_s7 = inlined_call_operand.vmem [shape: f32[8,8], index: 7, kind: output, shape index: {}]  }
   0x1   :  { %s23_s25 = sshll.u32 %s627_s24, 4  ;;  %s603_s28 = scalar_lea.hbm %s808_s2, 4096  ;;  %s24_s25 = int_to_ptr.vmem [resolvable:$true] %s23_s25 }
   0x2   :  { %p604_p0 = scmp.ne.s32.totalorder %s808_s2, %s603_s28  ;;  %p607_p1 = scmp.lt.u32.totalorder %s603_s28, %s808_s2 }
   0x4   :  { %p609_p2 = pnand %p607_p1, %p604_p0 }
   0x6   :  { %612 = shalt.err (!%p609_p2)
}
   0x7   :  { %s613_s10 = scalar_lea.vmem %s24_s25, 4096  ;;  %p618_p4 = scmp.lt.s32.totalorder %s24_s25, %s24_s25 }
   0x8   :  { %p614_p3 = scmp.ne.s32.totalorder %s24_s25, %s613_s10  ;;  %p619_p5 = scmp.lt.s32.totalorder %s613_s10, %s613_s10 }
   0xa   :  { %p620_p6 = por %p619_p5, %p618_p4 }
   0xc   :  { %p621_p7 = pnand %p620_p6, %p614_p3 }
   0xe   :  { %624 = shalt.err (!%p621_p7)
}
   0xf   :  { %s628_s11 = smov 128   ;;  %s629_s12 = smov 8  }
  0x10   :  { %29 = dma.hbm_to_vmem [thread:$0]  %s808_s2, 4096, %s24_s25, [#allocation4], %s628_s11, %s628_s11, %s629_s12  }
  0x11   :  { %625 = dma.done.wait [#allocation4], 4096  }
  0x12   :  { %626 = vsyncadd [#allocation4], 4294963200  ;;  %v630_v0 = vmov 0.0   ;;  %v46_v1 = vld [vmem:[%s807_s1 + $0x8] sm:$0xff]  ;;  %v48_v2 = vld [vmem:[%s807_s1 + $0x18] sm:$0xff]  ;;  %vm72_vm0 = vcmask 523264  }
  0x13   :  { %140 = vmatprep.mubr.f32.mxu0 %v630_v0  ;;  %v45_v3 = vld [vmem:[%s807_s1] sm:$0xff]  ;;  %v523_v4 = vpack.c.bf16 %v48_v2, %v46_v1  ;;  %v47_v5 = vld [vmem:[%s807_s1 + $0x10] sm:$0xff]  ;;  %v50_v6 = vld [vmem:[%s807_s1 + $0x28] sm:$0xff]  ;;  %vm632_vm1 = vmmov 0   ;;  %vm342_vm2 = vcmask 261120   ;;  %vm419_vm3 = vcmask 64512  }
  0x14   :  { %v52_v7 = vld [vmem:[%s807_s1 + $0x38] sm:$0xff]  ;;  %v525_v8 = vpack.c.bf16 %v47_v5, %v45_v3  ;;  %v49_v10 = vld [vmem:[%s807_s1 + $0x20] sm:$0xff]  ;;  %v51_v11 = vld [vmem:[%s807_s1 + $0x30] sm:$0xff] }
  0x15   :  { %v527_v9 = vpack.c.bf16 %v52_v7, %v50_v6  ;;  %v54_v12 = vld [vmem:[%s807_s1 + $0x48] sm:$0xff]  ;;  %524 = vmatprep.subr.bf16.mxu0 %v523_v4  ;;  %v56_v13 = vld [vmem:[%s807_s1 + $0x58] sm:$0xff]  ;;  %v529_v14 = vpack.c.bf16 %v51_v11, %v49_v10  ;;  %v53_v15 = vld [vmem:[%s807_s1 + $0x40] sm:$0xff] }
  0x16   :  { %526 = vmatpush1.bf16.msra.mxu0 %v525_v8  ;;  %v55_v16 = vld [vmem:[%s807_s1 + $0x50] sm:$0xff]  ;;  %v531_v17 = vpack.c.bf16 %v56_v13, %v54_v12  ;;  %v58_v18 = vld [vmem:[%s807_s1 + $0x68] sm:$0xff]  ;;  %v60_v19 = vld [vmem:[%s807_s1 + $0x78] sm:$0xff] }
  0x17   :  { %528 = vmatprep.subr.bf16.mxu0 %v527_v9  ;;  %v165_v20 = vld [vmem:[#allocation3 + $0x80] sm:$0xff]  ;;  %v166_v21 = vld [vmem:[#allocation3 + $0x88] sm:$0xff]  ;;  %v167_v26 = vld [vmem:[#allocation3 + $0x90] sm:$0xff]  ;;  %v533_v29 = vpack.c.bf16 %v55_v16, %v53_v15  ;;  %v535_v34 = vpack.c.bf16 %v60_v19, %v58_v18 }
  0x18   :  { %v149_v22 = vld [vmem:[#allocation3] sm:$0xff]  ;;  %v150_v23 = vld [vmem:[#allocation3 + $0x8] sm:$0xff]  ;;  %v539_v24 = vpack.c.bf16 %v166_v21, %v165_v20  ;;  %v168_v27 = vld [vmem:[#allocation3 + $0x98] sm:$0xff] }
  0x19   :  { %v541_v25 = vpack.c.bf16 %v150_v23, %v149_v22  ;;  %v151_v28 = vld [vmem:[#allocation3 + $0x10] sm:$0xff]  ;;  %v543_v30 = vpack.c.bf16 %v168_v27, %v167_v26  ;;  %v152_v31 = vld [vmem:[#allocation3 + $0x18] sm:$0xff]  ;;  %v169_v32 = vld [vmem:[#allocation3 + $0xa0] sm:$0xff] }
  0x1a   :  { %530 = vmatpush1.bf16.msra.mxu0 %v529_v14  ;;  %v170_v33 = vld [vmem:[#allocation3 + $0xa8] sm:$0xff]  ;;  %v57_v35 = vld [vmem:[%s807_s1 + $0x60] sm:$0xff]  ;;  %v59_v36 = vld [vmem:[%s807_s1 + $0x70] sm:$0xff]  ;;  %540 = vmatprep.subr.bf16.mxu1 %v539_v24  ;;  %v545_v37 = vpack.c.bf16 %v152_v31, %v151_v28  ;;  %v631_v14 = vmov 0.0|0.0  }
  0x1b   :  { %532 = vmatprep.subr.bf16.mxu0 %v531_v17  ;;  %542 = vmatpush3.bf16.msra.mxu1 %v541_v25  ;;  %v547_v38 = vpack.c.bf16 %v170_v33, %v169_v32  ;;  %v153_v39 = vld [vmem:[#allocation3 + $0x20] sm:$0xff]  ;;  %v154_v40 = vld [vmem:[#allocation3 + $0x28] sm:$0xff]  ;;  %v537_v41 = vpack.c.bf16 %v59_v36, %v57_v35  ;;  %v171_v42 = vld [vmem:[#allocation3 + $0xb0] sm:$0xff] }
  0x1c   :  { %544 = vmatprep.subr.bf16.mxu1 %v543_v30  ;;  %v172_v43 = vld [vmem:[#allocation3 + $0xb8] sm:$0xff]  ;;  %v549_v44 = vpack.c.bf16 %v154_v40, %v153_v39  ;;  %v155_v46 = vld [vmem:[#allocation3 + $0x30] sm:$0xff]  ;;  %v41_v48 = vld [vmem:[%s806_s0] sm:$0xff]  ;;  %v62_v30 = vlaneseq }
  0x1d   :  { %v551_v45 = vpack.c.bf16 %v172_v43, %v171_v42  ;;  %v156_v47 = vld [vmem:[#allocation3 + $0x38] sm:$0xff]  ;;  %v173_v49 = vld [vmem:[#allocation3 + $0xc0] sm:$0xff]  ;;  %v174_v50 = vld [vmem:[#allocation3 + $0xc8] sm:$0xff] }
  0x1e   :  { %534 = vmatpush1.bf16.msra.mxu0 %v533_v29  ;;  %v553_v51 = vpack.c.bf16 %v156_v47, %v155_v46  ;;  %v555_v52 = vpack.c.bf16 %v174_v50, %v173_v49  ;;  %v157_v53 = vld [vmem:[#allocation3 + $0x40] sm:$0xff]  ;;  %v158_v54 = vld [vmem:[#allocation3 + $0x48] sm:$0xff]  ;;  %v175_v55 = vld [vmem:[#allocation3 + $0xd0] sm:$0xff]  ;;  %v63_v31 = vshrl.u32 %v62_v30, 7 }
  0x1f   :  { %536 = vmatprep.subr.bf16.mxu0 %v535_v34  ;;  %546 = vmatpush3.bf16.msra.mxu1 %v545_v37  ;;  %v176_v56 = vld [vmem:[#allocation3 + $0xd8] sm:$0xff]  ;;  %v557_v57 = vpack.c.bf16 %v158_v54, %v157_v53  ;;  %v159_v59 = vld [vmem:[#allocation3 + $0x50] sm:$0xff]  ;;  %v177_v61 = vld [vmem:[#allocation3 + $0xe0] sm:$0xff] }
  0x20   :  { %548 = vmatprep.subr.bf16.mxu1 %v547_v38  ;;  %v559_v58 = vpack.c.bf16 %v176_v56, %v175_v55  ;;  %v160_v60 = vld [vmem:[#allocation3 + $0x58] sm:$0xff]  ;;  %v178_v62 = vld [vmem:[#allocation3 + $0xe8] sm:$0xff]  ;;  %v161_v2 = vld [vmem:[#allocation3 + $0x60] sm:$0xff]  ;;  %v64_v32 = vsub.s32 0, %v63_v31  ;;  %v68_v34 = vsub.s32 1, %v63_v31 }
  0x21   :  { %v561_v63 = vpack.c.bf16 %v160_v60, %v159_v59  ;;  %v563_v1 = vpack.c.bf16 %v178_v62, %v177_v61  ;;  %v162_v3 = vld [vmem:[#allocation3 + $0x68] sm:$0xff]  ;;  %v179_v5 = vld [vmem:[#allocation3 + $0xf0] sm:$0xff]  ;;  %v180_v6 = vld [vmem:[#allocation3 + $0xf8] sm:$0xff]  ;;  %v341_v60 = vstv %s812_s6 }
  0x22   :  { %538 = vmatpush1.bf16.msra.mxu0 %v537_v41  ;;  %v565_v4 = vpack.c.bf16 %v162_v3, %v161_v2  ;;  %v567_v7 = vpack.c.bf16 %v180_v6, %v179_v5  ;;  %v163_v8 = vld [vmem:[#allocation3 + $0x70] sm:$0xff]  ;;  %v164_v9 = vld [vmem:[#allocation3 + $0x78] sm:$0xff]  ;;  %v252_v11 = vld [vmem:[%s809_s3] sm:$0xff] }
  0x23   :  { %550 = vmatpush3.bf16.msra.mxu1 %v549_v44  ;;  %v569_v10 = vpack.c.bf16 %v164_v9, %v163_v8  ;;  %v253_v12 = vld [vmem:[%s809_s3 + $0x8] sm:$0xff]  ;;  %v254_v13 = vld [vmem:[%s809_s3 + $0x10] sm:$0xff]  ;;  %571 = vmatprep.subr.bf16.mxu0 %v631_v14  ;;  %v255_v16 = vld [vmem:[%s809_s3 + $0x18] sm:$0xff] }
  0x24   :  { %552 = vmatprep.subr.bf16.mxu1 %v551_v45  ;;  %v572_v15 = vpack.c.bf16 %v253_v12, %v252_v11  ;;  %v575_v17 = vpack.c.bf16 %v255_v16, %v254_v13  ;;  %v256_v18 = vld [vmem:[%s809_s3 + $0x20] sm:$0xff]  ;;  %v257_v19 = vld [vmem:[%s809_s3 + $0x28] sm:$0xff]  ;;  %v258_v21 = vld [vmem:[%s809_s3 + $0x30] sm:$0xff] }
  0x25   :  { %426 = vmatmul.mubr.msk.f32.vlgmr.msra.gmra.mrb[0].mxu0 %vm72_vm0, %v41_v48  ;;  %v578_v20 = vpack.c.bf16 %v257_v19, %v256_v18  ;;  %v259_v22 = vld [vmem:[%s809_s3 + $0x38] sm:$0xff]  ;;  %v260_v24 = vld [vmem:[%s809_s3 + $0x40] sm:$0xff]  ;;  %v261_v25 = vld [vmem:[%s809_s3 + $0x48] sm:$0xff] }
  0x26   :  { %573 = vmatpush3.bf16.msra.mxu0 %v572_v15  ;;  %v581_v23 = vpack.c.bf16 %v259_v22, %v258_v21  ;;  %v584_v26 = vpack.c.bf16 %v261_v25, %v260_v24  ;;  %v262_v27 = vld [vmem:[%s809_s3 + $0x50] sm:$0xff]  ;;  %v263_v28 = vld [vmem:[%s809_s3 + $0x58] sm:$0xff]  ;;  %v42_v33 = vld [vmem:[%s810_s4] ss:$8 sm:$0x3]  ;;  %515 = vmatprep.mubr.msk.f32.mxu0 %vm632_vm1, %v630_v0 }
  0x27   :  { %554 = vmatpush3.bf16.msra.mxu1 %v553_v51  ;;  %574 = vmatprep.subr.bf16.mxu0 %v631_v14  ;;  %v587_v29 = vpack.c.bf16 %v263_v28, %v262_v27  ;;  %v65_v35 = vrot.slane %v42_v33, %v64_v32  ;;  %v69_v36 = vrot.slane %v42_v33, %v68_v34  ;;  %v264_v43 = vld [vmem:[%s809_s3 + $0x60] sm:$0xff]  ;;  %v265_v44 = vld [vmem:[%s809_s3 + $0x68] sm:$0xff]  ;;  %v266_v46 = vld [vmem:[%s809_s3 + $0x70] sm:$0xff] }
  0x28   :  { %556 = vmatprep.subr.bf16.mxu1 %v555_v52  ;;  %v590_v45 = vpack.c.bf16 %v265_v44, %v264_v43  ;;  %v267_v47 = vld [vmem:[%s809_s3 + $0x78] sm:$0xff]  ;;  %v43_v50 = vld [vmem:[%s810_s4 + $0x1] ss:$0 sm:$0xff]  ;;  %v44_v55 = vld [vmem:[%s810_s4 + $0x2] ss:$0 sm:$0xff] }
  0x29   :  { %v593_v48 = vpack.c.bf16 %v267_v47, %v266_v46  ;;  %v339_v59 = vld [vmem:[%s811_s5] sm:$0xff] }
  0x2a   :  { %576 = vmatpush3.bf16.msra.mxu0 %v575_v17 }
  0x2b   :  { %558 = vmatpush3.bf16.msra.mxu1 %v557_v57  ;;  %577 = vmatprep.subr.bf16.mxu0 %v631_v14 }
  0x2c   :  { %560 = vmatprep.subr.bf16.mxu1 %v559_v58 }
  0x2e   :  { %579 = vmatpush3.bf16.msra.mxu0 %v578_v20 }
  0x2f   :  { %562 = vmatpush3.bf16.msra.mxu1 %v561_v63  ;;  %580 = vmatprep.subr.bf16.mxu0 %v631_v14 }
  0x30   :  { %564 = vmatprep.subr.bf16.mxu1 %v563_v1 }
  0x32   :  { %582 = vmatpush3.bf16.msra.mxu0 %v581_v23 }
  0x33   :  { %566 = vmatpush3.bf16.msra.mxu1 %v565_v4  ;;  %583 = vmatprep.subr.bf16.mxu0 %v631_v14 }
  0x34   :  { %568 = vmatprep.subr.bf16.mxu1 %v567_v7 }
  0x36   :  { %585 = vmatpush3.bf16.msra.mxu0 %v584_v26 }
  0x37   :  { %570 = vmatpush3.bf16.msra.mxu1 %v569_v10  ;;  %586 = vmatprep.subr.bf16.mxu0 %v631_v14 }
  0x38   :  { %518 = vmatprep.subr.mxu1 %v630_v0 }
  0x3a   :  { %588 = vmatpush3.bf16.msra.mxu0 %v587_v29 }
  0x3b   :  { %589 = vmatprep.subr.bf16.mxu0 %v631_v14 }
  0x3e   :  { %591 = vmatpush3.bf16.msra.mxu0 %v590_v45 }
  0x3f   :  { %592 = vmatprep.subr.bf16.mxu0 %v631_v14 }
  0x42   :  { %594 = vmatpush3.bf16.msra.mxu0 %v593_v48 }
  0xf8   :  { %v142_v37 = vpop.f32.mrb[0].mxu0 }
  0xf9   :  { %v143_v38 = vadd.f32 %v142_v37, %v65_v35  ;;  %v144_v39 = vpop.f32.mrb[1].mxu0 }
  0xfa   :  { %v145_v40 = vadd.f32 %v144_v39, %v69_v36 }
  0xfb   :  { %v147_v42 = vmax.f32 %v143_v38, 0.0 }
  0xfc   :  { %v148_v41 = vmax.f32 %v145_v40, 0.0 }
  0xfe   :  { %245 = vmatprep.mubr.f32.mxu1 %v148_v41 }
  0xff   :  { %246 = vmatmul.mubr.f32.vlgmr.msra.gmra.mrb[0].mxu1 %v147_v42 }
 0x100   :  { %520 = vmatprep.mubr.msk.f32.mxu1 %vm632_vm1, %v630_v0 }
 0x1d2   :  { %v461_v49 = vpop.f32.mrb[0].mxu1 }
 0x1d3   :  { %v462_v51 = vpop.f32.mrb[1].mxu1 }
 0x1d4   :  { %v463_v52 = vadd.f32 %v462_v51, %v461_v49 }
 0x1d6   :  { %v248_v53 = vadd.f32 %v463_v52, %v43_v50 }
 0x1d8   :  { %v251_v54 = vmax.f32 %v248_v53, 0.0 }
 0x1da   :  { %516 = vmatmul.mubr.f32.vlgmr.msra.gmra.mrb[2].mxu0 %v251_v54 }
 0x2ad   :  { %v334_v56 = vpop.f32.mrb[2].mxu0 }
 0x2ae   :  { %v335_v57 = vadd.f32 %v334_v56, %v44_v55  ;;  %v517_v58 = vpop.f32.mrb[3].mxu0 }
 0x2b0   :  { %601 = vtanh.f32 %v335_v57 }
 0x2ba   :  { %v602_v0 = vpop.eup %601 }
 0x2bb   :  { %519 = vmatpush3.xpose.msk.msra.mxu1 %vm342_vm2, %v602_v0 }
 0x2be   :  { %521 = vmatmul.mubr.msk.f32.vlgmr.msra.gmra.mrb[2].mxu1 %vm342_vm2, %v339_v59 }
 0x391   :  { %v415_v61 = vpop.f32.mrb[2].mxu1 }
 0x392   :  { %v416_v62 = vadd.f32 %v415_v61, %v341_v60  ;;  %v522_v63 = vpop.f32.mrb[3].mxu1 }
 0x394   :  { %420 = vst.msk [vmem:[%s813_s7] sm:$0xff] %vm419_vm3, %v416_v62 }
 0x395   :  { %425 = vsyncpa [#allocation4], 1 }

</bundles_post_ra>
